<compile_context>
chip_gen: v6e
topology: v6e:2x2x1
jax: 0.10.0
libtpu: 0.0.40
codegen_flags: <defaults>
</compile_context>

<pallas_src>
import functools

import jax
import jax.numpy as jnp
from jax import lax
from jax.experimental import pallas as pl
from jax.experimental.pallas import tpu as pltpu

IGNORE_INDEX = -100           # PyTorch nn.CrossEntropyLoss default
_OUT_SUB, _OUT_LANE = 8, 128  # lane-dense partial-output block


def _ce_kernel(logits_ref, tgt_ref, sum_ref, cnt_ref, *, tile_b, n_total):
    """One grid step: (tile_b, C) logits + (tile_b, 1) targets ->
    partial NLL sum and partial valid-target count (full (1,8,128) blocks)."""
    i = pl.program_id(0)
    t = tgt_ref[...]                                        # (TB, 1) int32

    # Row validity (handles the cdiv-padded last tile) and ignore_index.
    local_row = lax.broadcasted_iota(jnp.int32, (tile_b, 1), 0)
    row_valid = (local_row + i * tile_b) < n_total
    valid = row_valid & (t != IGNORE_INDEX)                 # (TB, 1) bool

    # ---- Pass 1 (native dtype, no f32 tile copy): row max + target logit ----
    # The gather is fused with the max sweep by comparing against the raw
    # logits; at most one element per row is selected, so the sum is exact
    # even in bf16.
    x = logits_ref[...]                                     # (TB, C) native dt
    m = jnp.max(x, axis=-1, keepdims=True).astype(jnp.float32)        # (TB,1)
    col = lax.broadcasted_iota(jnp.int32, x.shape, 1)
    tgt_logit = jnp.sum(jnp.where(col == t, x, jnp.zeros_like(x)),
                        axis=-1, keepdims=True).astype(jnp.float32)   # (TB,1)

    # ---- Pass 2 (single f32 sweep): sum(exp(x - m)) -------------------------
    # Re-read the ref so the f32 upcast fuses into the exp pass instead of
    # materializing a full (TB, C) f32 copy of the tile.
    sum_e = jnp.sum(jnp.exp(logits_ref[...].astype(jnp.float32) - m),
                    axis=-1, keepdims=True)                 # (TB, 1)

    # nll = log(sum(exp(x - m))) + m - x[target]
    per_sample = jnp.log(sum_e) + m - tgt_logit             # (TB, 1)
    # Select (NOT multiply): garbage Inf/NaN in padded rows must not propagate.
    per_sample = jnp.where(valid, per_sample, 0.0)

    partial_sum = jnp.sum(per_sample)
    partial_cnt = jnp.sum(valid.astype(jnp.float32))

    # Full, unmasked lane-dense stores (one (8,128) block per grid step).
    sum_ref[...] = jnp.full(sum_ref.shape, partial_sum, jnp.float32)
    cnt_ref[...] = jnp.full(cnt_ref.shape, partial_cnt, jnp.float32)


def _vmem_limit_default():
    """Generation-aware VMEM limit: ~38 MiB on v7x (64 MiB/TC), ~76 MiB on
    v5e/v6e (128 MiB).  Falls back to a v7x-safe value if the query fails."""
    cap = 64 * 1024 * 1024
    try:
        info = pltpu.get_tpu_info()
        cap = int(getattr(info, "vmem_capacity_bytes", cap))
    except Exception:
        pass
    return min(96 * 1024 * 1024, max(32 * 1024 * 1024, int(cap * 0.6)))


def _pick_tile_b(n_rows, c, itemsize, align, vmem_limit_bytes, max_tile_b):
    """Largest aligned batch tile whose *total* live footprint (double-buffered
    input + f32 exp temp + int32 iota, ~2*itemsize+12 B/elem) fits half the
    VMEM limit, clamped so the grid has >= 2 (target ~4) steps."""
    per_row = max(1, c * (2 * itemsize + 12))
    budget = vmem_limit_bytes // 2
    tile_b = min(max_tile_b, max(align, budget // per_row), n_rows)
    target = -(-n_rows // 4)                 # ceil(n/4): aim for >= 4 steps
    if tile_b > target:
        tile_b = max(align, target)
    tile_b = max(align, (tile_b // align) * align)
    return min(tile_b, n_rows)


def cross_entropy_loss(y_hat, y, *,
                       max_tile_b=2048,
                       vmem_limit_bytes=None):
    """Pallas implementation of nn.CrossEntropyLoss()(y_hat, y)
    (mean reduction, ignore_index=-100, class-index targets)."""
    n, c = y_hat.shape
    itemsize = jnp.dtype(y_hat.dtype).itemsize
    # Row alignment follows sublane packing of the logits dtype.
    align = {4: 8, 2: 16, 1: 32}.get(itemsize, 8)
    if vmem_limit_bytes is None:
        vmem_limit_bytes = _vmem_limit_default()

    y2d = y.astype(jnp.int32).reshape(n, 1)

    # Tiny batches only: pad up to one aligned tile (negligible copy).  Larger
    # non-divisible batches are handled by the cdiv grid + row mask (no copy).
    if n < align:
        pad = align - n
        y_hat = jnp.pad(y_hat, ((0, pad), (0, 0)))
        y2d = jnp.pad(y2d, ((0, pad), (0, 0)), constant_values=IGNORE_INDEX)
        n_rows = align
    else:
        n_rows = n

    tile_b = _pick_tile_b(n_rows, c, itemsize, align, vmem_limit_bytes,
                          max_tile_b)
    grid = (n_rows + tile_b - 1) // tile_b

    kernel = functools.partial(_ce_kernel, tile_b=tile_b, n_total=n)

    out_shape = (
        jax.ShapeDtypeStruct((grid, _OUT_SUB, _OUT_LANE), jnp.float32),  # sums
        jax.ShapeDtypeStruct((grid, _OUT_SUB, _OUT_LANE), jnp.float32),  # cnts
    )

    # Advisory cost: one pass of logits from HBM, ~5 flops/elem, 1 exp/elem.
    cost = pl.CostEstimate(
        flops=int(5 * n_rows * c),
        transcendentals=int(n_rows * c),
        bytes_accessed=int(n_rows * c * itemsize + n_rows * 4
                           + 2 * grid * _OUT_SUB * _OUT_LANE * 4),
    )

    sums, cnts = pl.pallas_call(
        kernel,
        out_shape=out_shape,
        grid_spec=pltpu.PrefetchScalarGridSpec(
            num_scalar_prefetch=0,
            grid=(grid,),
            in_specs=[
                pl.BlockSpec((tile_b, c), lambda i: (i, 0)),   # logits tile
                # (tile_b, 1) int32 targets: pads to 128 lanes in VMEM; kept
                # knowingly (tiny vs. the logits tile) to avoid an in-kernel
                # lane->sublane transpose of the target vector.
                pl.BlockSpec((tile_b, 1), lambda i: (i, 0)),
            ],
            out_specs=[
                pl.BlockSpec((1, _OUT_SUB, _OUT_LANE), lambda i: (i, 0, 0)),
                pl.BlockSpec((1, _OUT_SUB, _OUT_LANE), lambda i: (i, 0, 0)),
            ],
        ),
        compiler_params=pltpu.CompilerParams(
            dimension_semantics=("parallel",),   # independent tiles -> megacore
            vmem_limit_bytes=int(vmem_limit_bytes),
        ),
        cost_estimate=cost,
    )(y_hat, y2d)

    loss_sum = jnp.sum(sums[:, 0, 0])
    valid_cnt = jnp.sum(cnts[:, 0, 0])
    # NOTE: if every target is ignore_index, this is 0/0 -> NaN, matching
    # PyTorch's mean-reduction behavior.
    return {"loss": loss_sum / valid_cnt}


def _reference(y_hat, y):
    """Pure-JAX reference matching PyTorch defaults (mean, ignore_index=-100)."""
    logp = jax.nn.log_softmax(y_hat.astype(jnp.float32), axis=-1)
    tgt = y.astype(jnp.int32)
    valid = tgt != IGNORE_INDEX
    safe_tgt = jnp.where(valid, tgt, 0)
    nll = -jnp.take_along_axis(logp, safe_tgt[:, None], axis=-1)[:, 0]
    nll = jnp.where(valid, nll, 0.0)
    return jnp.sum(nll) / jnp.sum(valid.astype(jnp.float32))


if __name__ == "__main__":
    key = jax.random.PRNGKey(0)
    k1, k2, k3, k4, k5, k6 = jax.random.split(key, 6)

    # Case 1: basic f32 shapes (2 grid steps).
    N, C = 16, 32
    y_hat = jax.random.normal(k1, (N, C), dtype=jnp.float32)
    y = jax.random.randint(k2, (N,), 0, C, dtype=jnp.int32)
    loss = jax.block_until_ready(cross_entropy_loss(y_hat, y)["loss"])
    ref = _reference(y_hat, y)
    assert jnp.allclose(loss, ref, rtol=1e-5, atol=1e-5), (loss, ref)

    # Case 2: non-divisible batch (cdiv + row mask) and an ignored target.
    N2, C2 = 13, 40
    y_hat2 = jax.random.normal(k3, (N2, C2), dtype=jnp.float32)
    y2 = jax.random.randint(k4, (N2,), 0, C2, dtype=jnp.int32)
    y2 = y2.at[3].set(IGNORE_INDEX)
    loss2 = jax.block_until_ready(cross_entropy_loss(y_hat2, y2)["loss"])
    ref2 = _reference(y_hat2, y2)
    assert jnp.allclose(loss2, ref2, rtol=1e-5, atol=1e-5), (loss2, ref2)

    # Case 3: bf16 logits (16-row alignment path), non-divisible batch.
    N3, C3 = 24, 33
    y_hat3 = jax.random.normal(k5, (N3, C3), dtype=jnp.bfloat16)
    y3 = jax.random.randint(k6, (N3,), 0, C3, dtype=jnp.int32)
    y3 = y3.at[7].set(IGNORE_INDEX)
    loss3 = jax.block_until_ready(cross_entropy_loss(y_hat3, y3)["loss"])
    ref3 = _reference(y_hat3, y3)
    assert jnp.allclose(loss3, ref3, rtol=1e-4, atol=1e-4), (loss3, ref3)

    print("KERNEL_OK")
</pallas_src>

<mosaic_0001>
module attributes {stable_mosaic.version = 11 : i64} {
  func.func @_ce_kernel(%arg0: i32, %arg1: memref<8x32xf32, #tpu.memory_space<vmem>>, %arg2: memref<8x1xi32, #tpu.memory_space<vmem>>, %arg3: memref<1x8x128xf32, #tpu.memory_space<vmem>>, %arg4: memref<1x8x128xf32, #tpu.memory_space<vmem>>) attributes {dimension_semantics = [#tpu.dimension_semantics<parallel>], iteration_bounds = array<i64: 2>, scalar_prefetch = 0 : i64, scratch_operands = 0 : i64, tpu.core_type = #tpu.core_type<tc>, window_params = [{transform_indices = @transform_0, window_bounds = array<i64: 8, 32>}, {transform_indices = @transform_1, window_bounds = array<i64: 8, 1>}, {transform_indices = @transform_2, window_bounds = array<i64: 1, 8, 128>}, {transform_indices = @transform_3, window_bounds = array<i64: 1, 8, 128>}]} {
    %c0 = arith.constant 0 : index
    %c0_0 = arith.constant 0 : index
    %0 = vector.load %arg2[%c0, %c0_0] : memref<8x1xi32, #tpu.memory_space<vmem>>, vector<8x1xi32>
    %1 = tpu.iota {dimensions = array<i32: 0>} : vector<8x1xi32>
    %c8_i32 = arith.constant 8 : i32
    %2 = arith.muli %arg0, %c8_i32 : i32
    %3 = vector.broadcast %2 : i32 to vector<8x1xi32>
    %4 = arith.addi %1, %3 : vector<8x1xi32>
    %c16_i32 = arith.constant 16 : i32
    %5 = vector.broadcast %c16_i32 : i32 to vector<8x1xi32>
    %6 = arith.cmpi slt, %4, %5 : vector<8x1xi32>
    %c-100_i32 = arith.constant -100 : i32
    %7 = vector.broadcast %c-100_i32 : i32 to vector<8x1xi32>
    %8 = arith.cmpi ne, %0, %7 : vector<8x1xi32>
    %9 = arith.andi %6, %8 : vector<8x1xi1>
    %c0_1 = arith.constant 0 : index
    %c0_2 = arith.constant 0 : index
    %10 = vector.load %arg1[%c0_1, %c0_2] : memref<8x32xf32, #tpu.memory_space<vmem>>, vector<8x32xf32>
    %cst = arith.constant dense<0xFF800000> : vector<8xf32>
    %11 = vector.multi_reduction <maximumf>, %10, %cst [1] : vector<8x32xf32> to vector<8xf32>
    %12 = vector.shape_cast %11 : vector<8xf32> to vector<8x1xf32>
    %13 = tpu.iota {dimensions = array<i32: 1>} : vector<8x32xi32>
    %14 = vector.broadcast %0 : vector<8x1xi32> to vector<8x32xi32>
    %15 = arith.cmpi eq, %13, %14 : vector<8x32xi32>
    %cst_3 = arith.constant 0.000000e+00 : f32
    %16 = vector.broadcast %cst_3 : f32 to vector<8x32xf32>
    %17 = arith.select %15, %10, %16 : vector<8x32xi1>, vector<8x32xf32>
    %cst_4 = arith.constant dense<0.000000e+00> : vector<8xf32>
    %18 = vector.multi_reduction <add>, %17, %cst_4 [1] : vector<8x32xf32> to vector<8xf32>
    %19 = vector.shape_cast %18 : vector<8xf32> to vector<8x1xf32>
    %c0_5 = arith.constant 0 : index
    %c0_6 = arith.constant 0 : index
    %20 = vector.load %arg1[%c0_5, %c0_6] : memref<8x32xf32, #tpu.memory_space<vmem>>, vector<8x32xf32>
    %21 = vector.broadcast %12 : vector<8x1xf32> to vector<8x32xf32>
    %22 = arith.subf %20, %21 : vector<8x32xf32>
    %23 = math.exp %22 : vector<8x32xf32>
    %cst_7 = arith.constant dense<0.000000e+00> : vector<8xf32>
    %24 = vector.multi_reduction <add>, %23, %cst_7 [1] : vector<8x32xf32> to vector<8xf32>
    %25 = vector.shape_cast %24 : vector<8xf32> to vector<8x1xf32>
    %26 = math.log %25 : vector<8x1xf32>
    %27 = arith.addf %26, %12 : vector<8x1xf32>
    %28 = arith.subf %27, %19 : vector<8x1xf32>
    %cst_8 = arith.constant 0.000000e+00 : f32
    %29 = vector.broadcast %cst_8 : f32 to vector<8x1xf32>
    %30 = arith.select %9, %28, %29 : vector<8x1xi1>, vector<8x1xf32>
    %31 = vector.shape_cast %30 : vector<8x1xf32> to vector<1x8x1xf32>
    %cst_9 = arith.constant dense<0.000000e+00> : vector<1xf32>
    %32 = vector.multi_reduction <add>, %31, %cst_9 [1, 2] : vector<1x8x1xf32> to vector<1xf32>
    %33 = vector.shape_cast %32 : vector<1xf32> to vector<1x1x1xf32>
    %34 = vector.extract %33[0, 0, 0] : f32 from vector<1x1x1xf32>
    %35 = arith.extui %9 : vector<8x1xi1> to vector<8x1xi32>
    %36 = arith.sitofp %35 : vector<8x1xi32> to vector<8x1xf32>
    %37 = vector.shape_cast %36 : vector<8x1xf32> to vector<1x8x1xf32>
    %cst_10 = arith.constant dense<0.000000e+00> : vector<1xf32>
    %38 = vector.multi_reduction <add>, %37, %cst_10 [1, 2] : vector<1x8x1xf32> to vector<1xf32>
    %39 = vector.shape_cast %38 : vector<1xf32> to vector<1x1x1xf32>
    %40 = vector.extract %39[0, 0, 0] : f32 from vector<1x1x1xf32>
    %41 = vector.broadcast %34 : f32 to vector<1x8x128xf32>
    %c0_11 = arith.constant 0 : index
    %c0_12 = arith.constant 0 : index
    %c0_13 = arith.constant 0 : index
    %42 = vector.load %arg3[%c0_11, %c0_12, %c0_13] : memref<1x8x128xf32, #tpu.memory_space<vmem>>, vector<1x8x128xf32>
    tpu.vector_store %arg3[%c0_11, %c0_12, %c0_13], %41 {strides = array<i32>} : memref<1x8x128xf32, #tpu.memory_space<vmem>>, vector<1x8x128xf32>,
    %43 = vector.broadcast %40 : f32 to vector<1x8x128xf32>
    %c0_14 = arith.constant 0 : index
    %c0_15 = arith.constant 0 : index
    %c0_16 = arith.constant 0 : index
    %44 = vector.load %arg4[%c0_14, %c0_15, %c0_16] : memref<1x8x128xf32, #tpu.memory_space<vmem>>, vector<1x8x128xf32>
    tpu.vector_store %arg4[%c0_14, %c0_15, %c0_16], %43 {strides = array<i32>} : memref<1x8x128xf32, #tpu.memory_space<vmem>>, vector<1x8x128xf32>,
    return
  }
  func.func @transform_0(%arg0: i32) -> (i32, i32) {
    %c0_i32 = arith.constant 0 : i32
    %c0_i32_0 = arith.constant 0 : i32
    return %arg0, %c0_i32 : i32, i32
  }
  func.func @transform_1(%arg0: i32) -> (i32, i32) {
    %c0_i32 = arith.constant 0 : i32
    %c0_i32_0 = arith.constant 0 : i32
    return %arg0, %c0_i32 : i32, i32
  }
  func.func @transform_2(%arg0: i32) -> (i32, i32, i32) {
    %c0_i32 = arith.constant 0 : i32
    %c0_i32_0 = arith.constant 0 : i32
    %c0_i32_1 = arith.constant 0 : i32
    return %arg0, %c0_i32, %c0_i32_0 : i32, i32, i32
  }
  func.func @transform_3(%arg0: i32) -> (i32, i32, i32) {
    %c0_i32 = arith.constant 0 : i32
    %c0_i32_0 = arith.constant 0 : i32
    %c0_i32_1 = arith.constant 0 : i32
    return %arg0, %c0_i32, %c0_i32_0 : i32, i32, i32
  }
}

</mosaic_0001>

<bundles_post_ra>
// kernel: tpu_custom_call.1
= control target key start
LH: loop header
LB: loop body
LE: loop exit
PB: predicated region body
PF: predicated region fallthrough
CT: control target
= control target key end

     0   :  { %9 = vsyncpa [#allocation3], 0  ;;  %s718_s0 = inlined_call_operand.vmem [shape: f32[16,32], index: 0, kind: input, shape index: {}]   ;;  %s719_s1 = inlined_call_operand.vmem [shape: s32[16,1], index: 1, kind: input, shape index: {}]   ;;  %s720_s2 = inlined_call_operand.hbm [shape: f32[2,8,128], index: 2, kind: output, shape index: {0}]   ;;  %s721_s3 = inlined_call_operand.hbm [shape: f32[2,8,128], index: 3, kind: output, shape index: {1}]  }
   0x1   :  { %11 = vsyncpa [#allocation3 + $0x1], 0 }
   0x2   :  { %12 = vsyncpa [#allocation5], 0 }
   0x3   :  { %14 = vsyncpa [#allocation5 + $0x1], 0  ;;  %s578_s12 = smov 0   ;;  %s580_s13 = smov 0  }
   0x4   :  { %s582_s14 = smov 0   ;;  %s584_s15 = smov 0  }
   0x5 LB: > { %s599_s16 = sadd.s32 4294967295, %s552_s15   ;;  %s391_s17 = sadd.s32 4294967294, %s552_s15   ;;  %s552_s15 = sphi %s584_s15, %s727_s15   ;;  %s548_s14 = sphi %s582_s14, %s726_s14   ;;  %s544_s13 = sphi %s580_s13, %s725_s13   ;;  %s540_s12 = sphi %s578_s12, %s724_s12  }
   0x6   : > { %s603_s18 = sadd.s32 1, %s552_s15   ;;  %s79_s19 = sadd.s32 1, %s548_s14 }
   0x7   : > { %s76_s20 = ssub.s32 %s552_s15, %s603_s18  ;;  %p89_p0 = scmp.ne.s32.totalorder %s548_s14, %s544_s13 }
   0x8   : > { %p77_p1 = scmp.eq.s32.totalorder %s76_s20, 0  ;;  %p90_p2 = scmp.eq.s32.totalorder %s599_s16, 1 }
   0x9   : > { %p95_p3 = scmp.ne.s32.totalorder %s544_s13, %s540_s12  ;;  %p96_p4 = scmp.eq.s32.totalorder %s391_s17, 1 }
   0xa   : > { %s614_s21 = scalar_select %p77_p1, %s548_s14, %s79_s19  }
   0xb   : > { %p616_p5 = por %p90_p2, %p89_p0  ;;  %p620_p6 = por %p96_p4, %p95_p3 }
   0xc   : > { %p394_p7 = scmp.ge.s32.totalorder %s552_s15, 1  ;;  %p154_p8 = scmp.lt.s32.totalorder %s552_s15, 3 }
   0xe   : > { %p155_p9 = pnand %p394_p7, %p154_p8 }
   0xf   : > { %p186_p10 = scmp.lt.s32.totalorder (!%p155_p9), %s599_s16, 1  ;;  %s399_s5 = sshll.u32 (!%p155_p9), %s599_s16, 3 }
  0x10   : > { %158 = sbr.rel (%p155_p9) target bundleno = 581 (0x245), region = 28  ;;  %s639_s6 = sand.u32 (!%p155_p9), 1, %s544_s13  }
  0x11   : > { %s395_s7 = sshll.u32 (!%p155_p9), %s639_s6, 3  ;;  %s403_s8 = sshll.u32 (!%p155_p9), %s599_s16, 7 }
  0x12   : > { %s178_s9 = scalar_lea.vmem (!%p155_p9), [#allocation2], %s395_s7  ;;  %s643_s11 = scalar_lea.vmem (!%p155_p9), [#allocation4], %s395_s7 }
  0x13   : > { %s275_s10 = sshll.u32 (!%p155_p9), %s178_s9, 4  ;;  %s288_s17 = sshll.u32 (!%p155_p9), %s643_s11, 4  ;;  %s653_s10 = int_to_ptr.vmem [resolvable:$true] %s275_s10  ;;  %s655_s17 = int_to_ptr.vmem [resolvable:$true] %s288_s17 }
  0x14   : > { %s257_s26 = scalar_lea.sflag (!%p155_p9), [#allocation3], %s639_s6  ;;  %s462_s27 = scalar_lea.vmem (!%p155_p9), %s653_s10, 128 }
  0x15   : > { %v554_v0 = vmov 0   ;;  %s187_s24 = scalar_select %p186_p10, %s599_s16, 1  ;;  %vm204_vm0 = vcmask 261120   ;;  %v195_v7 = vlaneseq  ;;  %v198_v16 = vstv %s399_s5 }
  0x16   : > { %457 = vset.pattern.permute.xlu0 %v554_v0  ;;  %vm229_vm5 = vcmask 7168   ;;  %v555_v24 = vmov 0.0   ;;  %p463_p11 = scmp.ne.s32.totalorder %s653_s10, %s462_s27 }
  0x17   : > { %s397_s25 = sshll.u32 %s187_s24, 3  ;;  %v209_v8 = vand.u32 127, %v195_v7  ;;  %v196_v15 = vshrl.u32 %v195_v7, 7  ;;  %s651_s24 = scalar_lea.hbm %s720_s2, %s403_s8 }
  0x18   : > { %s189_s28 = scalar_lea.vmem %s718_s0, %s397_s25  ;;  %s193_s4 = scalar_lea.vmem %s719_s1, %s397_s25 }
  0x19   : > { %v203_v1 = vld [vmem:[%s189_s28] sm:$0xff]  ;;  %v199_v17 = vadd.s32 %v198_v16, %v196_v15  ;;  %p464_p12 = pnand %p463_p11, %p616_p5  ;;  %s556_s28 = smov [#allocation2]  }
  0x1a   : > { %v205_v2 = vsel %vm204_vm0, %v203_v1, -inf  ;;  %v194_v3 = vld [vmem:[%s193_s4] sm:$0xff]  ;;  %s466_s29 = sshll.u32 %s556_s28, 4  ;;  %s467_s29 = int_to_ptr.vmem [resolvable:$false] %s466_s29 }
  0x1b   : > { %206 = vmax.xlane.f32.xlu0 %v205_v2  ;;  %vm201_vm2 = vcmp.ne.s32.totalorder %v194_v3, 4294967196  ;;  %vm200_vm3 = vcmp.lt.s32.totalorder %v199_v17, 16  ;;  %p465_p13 = pneg %p464_p12  ;;  %s468_s30 = scalar_lea.vmem %s467_s29, 256 }
  0x1c   : > { %vm202_vm4 = vmand %vm200_vm3, %vm201_vm2  ;;  %p469_p0 = scmp.lt.s32.totalorder %s653_s10, %s467_s29  ;;  %p470_p1 = scmp.lt.s32.totalorder %s468_s30, %s462_s27 }
  0x1d   : > { %v400_v25 = vsel %vm202_vm4, 1.0, %v555_v24 }
  0x1e   : > { %v242_v27 = vsel %vm229_vm5, %v400_v25, 0.0  ;;  %p471_p2 = por %p470_p1, %p469_p0 }
  0x20   : > { %p472_p3 = pnand %p471_p2, %p465_p13 }
  0x31   : > { %211 = vperm.xlu0 %457, %v194_v3  }
  0xa4   : > { %v207_v4 = vpop.xlane.xlu0 %206 }
  0xa5   : > { %v218_v5 = vsub.f32 %v203_v1, %v207_v4 }
  0xa7   : > { %v219_v6 = vmul.f32 1.442695, %v218_v5 }
  0xa9   : > { %458 = vpow2.f32 %v219_v6 }
  0xac   : > { %v212_v9 = vpop.permute.xlu0 %211 }
  0xad   : > { %vm213_vm1 = vcmp.eq.s32.totalorder %v209_v8, %v212_v9 }
  0xae   : > { %v214_v11 = vsel %vm213_vm1, %v203_v1, 0.0 }
  0xaf   : > { %v215_v13 = vsel %vm204_vm0, %v214_v11, 0.0 }
  0xb6   : > { %v459_v10 = vpop.eup %458 }
  0xb7   : > { %v221_v12 = vsel %vm204_vm0, %v459_v10, 0.0 }
  0xb8   : > { %222 = vadd.xlane.f32.xlu1 %v221_v12 }
  0xbc   : > { %216 = vadd.xlane.f32.xlu1 %v215_v13 }
 0x141   : > { %v223_v14 = vpop.xlane.xlu1 %222 }
 0x142   : > { %460 = vlog2.f32 %v223_v14 }
 0x145   : > { %v217_v20 = vpop.xlane.xlu1 %216 }
 0x14f   : > { %v461_v18 = vpop.eup %460 }
 0x150   : > { %v225_v19 = vmul.f32 0.6931472, %v461_v18 }
 0x152   : > { %v226_v21 = vadd.f32 %v225_v19, %v207_v4 }
 0x154   : > { %v227_v22 = vsub.f32 %v226_v21, %v217_v20 }
 0x156   : > { %v228_v23 = vsel %vm202_vm4, %v227_v22, 0.0 }
 0x157   : > { %v230_v26 = vsel %vm229_vm5, %v228_v23, 0.0 }
 0x158   : > { %231 = vadd.xlane.f32.xlu1 %v230_v26 }
 0x15c   : > { %243 = vadd.xlane.f32.xlu1 %v242_v27 }
 0x1e1   : > { %v232_v28 = vpop.xlane.xlu1 %231 }
 0x1e2   : > { %v233_v29 = vrot.slane %v232_v28, 4 }
 0x1e4   : > { %v234_v30 = vadd.f32 %v233_v29, %v232_v28 }
 0x1e5   : > { %v244_v31 = vpop.xlane.xlu1 %243 }
 0x1e6   : > { %v235_v32 = vrot.slane %v234_v30, 2  ;;  %v245_v33 = vrot.slane %v244_v31, 4 }
 0x1e8   : > { %v246_v34 = vadd.f32 %v245_v33, %v244_v31  ;;  %v236_v35 = vadd.f32 %v235_v32, %v234_v30 }
 0x1ea   : > { %v247_v36 = vrot.slane %v246_v34, 2  ;;  %v237_v37 = vrot.slane %v236_v35, 1 }
 0x1ec   : > { %v248_v38 = vadd.f32 %v247_v36, %v246_v34  ;;  %v238_v39 = vadd.f32 %v237_v37, %v236_v35 }
 0x1ee   : > { %407 = vpush %v238_v39  ;;  %v249_v40 = vrot.slane %v248_v38, 1 }
 0x1f0   : > { %v250_v41 = vadd.f32 %v249_v40, %v248_v38 }
 0x1f2   : > { %409 = vpush %v250_v41 }
 0x21f   : > { %s408_s25 = spop %407 }
 0x220   : > { %v252_v42 = vstv %s408_s25 }
 0x221   : > { %253 = vst [vmem:[%s178_s9] sm:$0xff] %v252_v42 }
 0x222   : > { %475 = shalt.err (!%p472_p3)
}
 0x223   : > { %s476_s4 = scalar_lea.hbm %s651_s24, 128  ;;  %s480_s9 = scalar_lea.hbm %s720_s2, 256 }
 0x224   : > { %p477_p4 = scmp.ne.s32.totalorder %s651_s24, %s476_s4  ;;  %p481_p9 = scmp.lt.s32.totalorder %s651_s24, %s720_s2 }
 0x225   : > { %p482_p10 = scmp.lt.s32.totalorder %s480_s9, %s476_s4 }
 0x226   : > { %p478_p7 = pnand %p477_p4, %p616_p5 }
 0x227   : > { %p483_p11 = por %p482_p10, %p481_p9 }
 0x228   : > { %p479_p8 = pneg %p478_p7 }
 0x22a   : > { %p484_p12 = pnand %p483_p11, %p479_p8 }
 0x22c   : > { %487 = shalt.err (!%p484_p12)
}
 0x22d   : > { %411 = dma.vmem_to_hbm [thread:$0]  (%p616_p5), %s653_s10, 128, %s651_s24, %s257_s26  }
 0x22e   : > { %s410_s25 = spop %409  ;;  %s286_s29 = scalar_lea.hbm %s721_s3, %s403_s8 }
 0x22f   : > { %v254_v43 = vstv %s410_s25  ;;  %s262_s30 = scalar_lea.sflag [#allocation5], %s639_s6  ;;  %s488_s4 = scalar_lea.vmem %s655_s17, 128 }
 0x230   : > { %255 = vst [vmem:[%s643_s11] sm:$0xff] %v254_v43  ;;  %p489_p13 = scmp.ne.s32.totalorder %s655_s17, %s488_s4  ;;  %s557_s5 = smov [#allocation4]  }
 0x231   : > { %s492_s7 = sshll.u32 %s557_s5, 4  ;;  %s493_s7 = int_to_ptr.vmem [resolvable:$false] %s492_s7 }
 0x232   : > { %p490_p0 = pnand %p489_p13, %p616_p5  ;;  %s494_s9 = scalar_lea.vmem %s493_s7, 256 }
 0x233   : > { %p495_p2 = scmp.lt.s32.totalorder %s655_s17, %s493_s7  ;;  %p496_p3 = scmp.lt.s32.totalorder %s494_s9, %s488_s4 }
 0x234   : > { %p491_p1 = pneg %p490_p0 }
 0x235   : > { %p497_p4 = por %p496_p3, %p495_p2 }
 0x237   : > { %p498_p7 = pnand %p497_p4, %p491_p1 }
 0x239   : > { %501 = shalt.err (!%p498_p7)
}
 0x23a   : > { %s502_s16 = scalar_lea.hbm %s286_s29, 128  ;;  %s506_s10 = scalar_lea.hbm %s721_s3, 256 }
 0x23b   : > { %p503_p8 = scmp.ne.s32.totalorder %s286_s29, %s502_s16  ;;  %p507_p11 = scmp.lt.s32.totalorder %s286_s29, %s721_s3 }
 0x23c   : > { %p508_p12 = scmp.lt.s32.totalorder %s506_s10, %s502_s16 }
 0x23d   : > { %p504_p9 = pnand %p503_p8, %p616_p5 }
 0x23e   : > { %p509_p13 = por %p508_p12, %p507_p11 }
 0x23f   : > { %p505_p10 = pneg %p504_p9 }
 0x241   : > { %p510_p0 = pnand %p509_p13, %p505_p10 }
 0x243   : > { %513 = shalt.err (!%p510_p0)
}
 0x244   : > { %412 = dma.vmem_to_hbm [thread:$0]  (%p616_p5), %s655_s17, 128, %s286_s29, %s262_s30  }
 0x245 PF: > { %p422_p1 = scmp.ge.s32.totalorder %s552_s15, 2  ;;  %s300_s26 = sand.u32 1, %s540_s12  }
 0x246   : > { %s301_s19 = scalar_lea.sflag [#allocation3], %s300_s26 }
 0x247   : > { %p416_p2 = pnand %p422_p1, %p620_p6 }
 0x249   : > { %p417_p3 = pneg %p416_p2 }
 0x24b   : > { %531 = dma.done.wait (%p417_p3), %s301_s19, 128  }
 0x24c   : > { %533 = vsyncadd (%p417_p3), %s301_s19, 4294967168  ;;  %s310_s20 = scalar_lea.sflag [#allocation5], %s300_s26 }
 0x24d   : > { %535 = dma.done.wait (%p417_p3), %s310_s20, 128  }
 0x24e   : > { %537 = vsyncadd (%p417_p3), %s310_s20, 4294967168  ;;  %p17_p5 = scmp.ge.s32.totalorder %s603_s18, 4   ;;  %s724_s12 = smov %s544_s13 }
 0x24f   : > { %s725_s13 = smov %s548_s14  ;;  %s726_s14 = smov %s614_s21 }
 0x250   : > { %s727_s15 = smov %s603_s18  ;;  %19 = sbr.rel (!%p17_p5) target bundleno = 5 (0x5), region = 83 }
 0x255   :  { %315 = vsyncpa [#allocation3], 1 }
 0x256   :  { %317 = vsyncpa [#allocation3 + $0x1], 1 }
 0x257   :  { %318 = vsyncpa [#allocation5], 1 }
 0x258   :  { %320 = vsyncpa [#allocation5 + $0x1], 1 }

</bundles_post_ra>
